<compile_context>
chip_gen: v5e
topology: v5e:2x2
jax: 0.10.0
libtpu: 0.0.40
codegen_flags: <defaults>
</compile_context>

<pallas_src>
import math

import jax
import jax.numpy as jnp
from jax import lax
from jax.experimental import pallas as pl
from jax.experimental.pallas import tpu as pltpu

_MIB = 1024 * 1024


def _round_up(x, m):
    return ((x + m - 1) // m) * m


def _clip_probs_kernel(x_ref, w_ref, txt_ref, bias_ref, probs_ref, acc_ref):
    """grid = (batch tile i [parallel], K tile k [arbitrary])."""
    k = pl.program_id(1)

    @pl.when(k == 0)
    def _():
        acc_ref[...] = jnp.zeros_like(acc_ref)

    # Image-encoder stub: x[tm, tk] bf16 @ Wimg[tk, D_pad] bf16, f32 accumulate.
    acc_ref[...] += jnp.dot(x_ref[...], w_ref[...],
                            preferred_element_type=jnp.float32)

    @pl.when(k == pl.num_programs(1) - 1)
    def _():
        # L2-normalize image features. Padded D columns are exactly zero; padded
        # batch rows are all-zero (eps keeps them finite; sliced off by wrapper).
        img = acc_ref[...]
        img = img * lax.rsqrt(jnp.sum(img * img, axis=-1, keepdims=True) + 1e-12)

        # Contrastive logits on the bf16 MXU path. Text features are already
        # L2-normalized with exp(logit_scale) folded in, shaped [D_pad, NCLS_pad].
        logits = jnp.dot(img.astype(jnp.bfloat16), txt_ref[...],
                         preferred_element_type=jnp.float32)

        # Precomputed additive padding bias (0 real class, -1e30 padding):
        # replaces per-tile iota + where(-inf).
        logits = logits + bias_ref[...]

        # probs = softmax(logits, dim=-1); divide goes to the EUP slot.
        m = jnp.max(logits, axis=-1, keepdims=True)
        e = jnp.exp(logits - m)
        denom = jnp.sum(e, axis=-1, keepdims=True)
        probs_ref[...] = e * pl.reciprocal(denom, approx=True)


def prepare_clip_params(wimg, txt_pooled, wtxt, logit_scale, *, tk_target=1024):
    """One-time prep (per adaptation/task, NOT per forward): text branch, bf16
    cast + lane padding of the image projection, class bias, K tile plan."""
    kdim, d = wimg.shape
    ncls = txt_pooled.shape[0]
    d_pad = _round_up(d, 128)                  # lane-dense acc / MXU-N on reduction matmul
    ncls_pad = _round_up(max(ncls, 1), 128)    # lane-dense class axis (unmasked stores)

    # ---- text branch (image independent) ----
    # TODO(synk): real CLIP text transformer replaced by a linear-projection stub.
    txt = jnp.dot(txt_pooled.astype(jnp.float32), wtxt.astype(jnp.float32))
    txt = txt * lax.rsqrt(jnp.sum(txt * txt, axis=-1, keepdims=True) + 1e-12)
    txt = txt * jnp.exp(logit_scale).astype(jnp.float32)      # fold logit_scale.exp()
    txt_t = jnp.zeros((d_pad, ncls_pad), jnp.bfloat16).at[:d, :ncls].set(
        txt.T.astype(jnp.bfloat16))

    # Additive class-padding bias: 0 for real classes, -1e30 for padded columns.
    cls_bias = jnp.full((1, ncls_pad), -1e30, jnp.float32).at[:, :ncls].set(0.0)

    # ---- K (pixel reduction) tile plan: batch independent ----
    tk = _round_up(min(max(tk_target, 128), _round_up(kdim, 128)), 128)
    for cand in range(tk, 127, -128):          # prefer a tk that divides kdim exactly
        if kdim % cand == 0:
            tk = cand
            break
    k_pad = _round_up(kdim, tk)

    w_pad = jnp.zeros((k_pad, d_pad), jnp.bfloat16).at[:kdim, :d].set(
        wimg.astype(jnp.bfloat16))

    return dict(w_pad=w_pad, txt_t=txt_t, cls_bias=cls_bias,
                tk=tk, k_pad=k_pad, kdim=kdim,
                d=d, d_pad=d_pad, ncls=ncls, ncls_pad=ncls_pad)


def clip_class_incremental_forward(image, params):
    """image: [B, C, H, W]; returns probs: [B, num_classes] f32 (softmax rows)."""
    w_pad, txt_t, cls_bias = params["w_pad"], params["txt_t"], params["cls_bias"]
    tk, k_pad, kdim = params["tk"], params["k_pad"], params["kdim"]
    d_pad, ncls, ncls_pad = params["d_pad"], params["ncls"], params["ncls_pad"]

    b = image.shape[0]
    x = image.reshape(b, -1)
    assert x.shape[1] == kdim

    # ---- generation-aware VMEM budget ----
    try:
        vmem_cap = int(pltpu.get_tpu_info().vmem_capacity_bytes)
    except Exception:
        vmem_cap = 64 * _MIB                    # conservative fallback
    small_vmem = vmem_cap <= 64 * _MIB          # v7x-class chip (64 MiB/TC, 2 TCs)
    budget = 40 * _MIB if small_vmem else 80 * _MIB
    headroom = 4 * _MIB

    # ---- batch tile: larger tm amortizes Wimg re-streaming across batch tiles ----
    tm = min(512, _round_up(b, 8))
    if small_vmem and b > 8 and _round_up(b, tm) // tm < 2:
        # keep >= 2 parallel batch tiles so both v7x TensorCores get work
        tm = _round_up((b + 1) // 2, 8)

    def tile_bytes_for(tm_):
        return (2 * tm_ * tk * 2                # x tile (double-buffered bf16)
                + 2 * tk * d_pad * 2            # Wimg tile (double-buffered bf16)
                + 2 * d_pad * ncls_pad * 2      # resident text features (2 bufs, bf16)
                + 2 * ncls_pad * 4              # class bias (2 bufs, f32)
                + 2 * tm_ * ncls_pad * 4        # output tile (2 bufs, f32)
                + tm_ * d_pad * 4)              # f32 accumulator scratch

    while tm > 8 and tile_bytes_for(tm) > budget - headroom:
        tm = max(8, _round_up(tm // 2, 8))

    b_pad = _round_up(b, tm)
    vmem_limit = int(min(max(tile_bytes_for(tm) + headroom, 32 * _MIB), budget))

    # ---- activations: cast to bf16; pad only if the tile plan requires it ----
    if b_pad == b and k_pad == kdim:
        x_in = x.astype(jnp.bfloat16)
    else:
        x_in = jnp.zeros((b_pad, k_pad), jnp.bfloat16).at[:b, :kdim].set(
            x.astype(jnp.bfloat16))

    grid = (b_pad // tm, k_pad // tk)

    cost = pl.CostEstimate(
        flops=2 * b_pad * k_pad * d_pad + 2 * b_pad * d_pad * ncls_pad,
        transcendentals=b_pad * (ncls_pad + 2),
        bytes_accessed=(x_in.size * 2 + (b_pad // tm) * w_pad.size * 2
                        + txt_t.size * 2 + b_pad * ncls_pad * 4),
    )

    probs_pad = pl.pallas_call(
        _clip_probs_kernel,
        out_shape=jax.ShapeDtypeStruct((b_pad, ncls_pad), jnp.float32),
        grid_spec=pltpu.PrefetchScalarGridSpec(
            num_scalar_prefetch=0,
            grid=grid,
            in_specs=[
                pl.BlockSpec((tm, tk), lambda i, k: (i, k)),            # x tile
                pl.BlockSpec((tk, d_pad), lambda i, k: (k, 0)),         # Wimg tile
                pl.BlockSpec((d_pad, ncls_pad), lambda i, k: (0, 0)),   # text feats (resident)
                pl.BlockSpec((1, ncls_pad), lambda i, k: (0, 0)),       # class bias (resident)
            ],
            out_specs=pl.BlockSpec((tm, ncls_pad), lambda i, k: (i, 0)),
            scratch_shapes=[pltpu.VMEM((tm, d_pad), jnp.float32)],      # f32 accumulator
        ),
        compiler_params=pltpu.CompilerParams(
            dimension_semantics=("parallel", "arbitrary"),
            vmem_limit_bytes=vmem_limit,
        ),
        cost_estimate=cost,
    )(x_in, w_pad, txt_t, cls_bias)

    return probs_pad[:b, :ncls]


def _reference_probs(image, wimg, txt_pooled, wtxt, logit_scale):
    """Pure-JAX reference mirroring the kernel's bf16 roundings."""
    x = image.reshape(image.shape[0], -1).astype(jnp.bfloat16)
    w = wimg.astype(jnp.bfloat16)
    img = jnp.dot(x, w, preferred_element_type=jnp.float32)
    img = img / jnp.linalg.norm(img, axis=-1, keepdims=True)
    txt = txt_pooled @ wtxt
    txt = txt / jnp.linalg.norm(txt, axis=-1, keepdims=True)
    txt = (txt * jnp.exp(logit_scale)).astype(jnp.bfloat16)
    logits = jnp.dot(img.astype(jnp.bfloat16), txt.T,
                     preferred_element_type=jnp.float32)
    return jax.nn.softmax(logits, axis=-1)


if __name__ == "__main__":
    # Small shapes consistent with the forward: batch=2, C=4, 16x16 images,
    # shared embedding dim 32, 8 classes seen so far, prompts of 8 tokens.
    B, C, H, W = 2, 4, 16, 16
    D = 32        # shared CLIP embedding dim
    E = 16        # token-embedding dim (text encoder stub)
    T = 8         # tokenized prompt length
    NCLS = 8      # len(current_class_names)
    VOCAB = 64

    key = jax.random.PRNGKey(0)
    k1, k2, k3, k4, k5 = jax.random.split(key, 5)

    image = jax.random.normal(k1, (B, C, H, W), jnp.float32)

    # Deterministic synthetic parameters (stand-ins for the CLIP encoders).
    wimg = jax.random.normal(k2, (C * H * W, D), jnp.float32) * 0.02
    wtxt = jax.random.normal(k3, (E, D), jnp.float32) * 0.02
    emb_table = jax.random.normal(k4, (VOCAB, E), jnp.float32) * 0.02

    # self.text_tokens = clip.tokenize([...prompts...]) -> ints [NCLS, T].
    # Embedding lookup + mean pooling is plain-JAX glue (gather).
    text_tokens = jax.random.randint(k5, (NCLS, T), 0, VOCAB)
    txt_pooled = jnp.mean(emb_table[text_tokens], axis=1)

    # CLIP logit_scale initialization: ln(1 / 0.07); forward applies .exp().
    logit_scale = jnp.float32(math.log(1.0 / 0.07))

    # One-time prep (would run in adaptation(), not per forward).
    params = prepare_clip_params(wimg, txt_pooled, wtxt, logit_scale, tk_target=1024)

    probs = clip_class_incremental_forward(image, params)
    probs = jax.block_until_ready(probs)

    assert probs.shape == (B, NCLS)
    assert bool(jnp.all(jnp.isfinite(probs)))
    assert bool(jnp.allclose(jnp.sum(probs, axis=-1), 1.0, atol=5e-3))

    # Semantics check against a pure-JAX reference using the same bf16 roundings
    # on the image and contrastive paths (isolates kernel correctness from dtype).
    ref = _reference_probs(image, wimg, txt_pooled, wtxt, logit_scale)
    assert bool(jnp.allclose(probs, ref, atol=5e-3)), (
        float(jnp.max(jnp.abs(probs - ref))))

    print("KERNEL_OK")
</pallas_src>

<mosaic_0001>
module attributes {stable_mosaic.version = 11 : i64} {
  func.func @_clip_probs_kernel(%arg0: i32, %arg1: i32, %arg2: memref<8x1024xbf16, #tpu.memory_space<vmem>>, %arg3: memref<1024x128xbf16, #tpu.memory_space<vmem>>, %arg4: memref<128x128xbf16, #tpu.memory_space<vmem>>, %arg5: memref<1x128xf32, #tpu.memory_space<vmem>>, %arg6: memref<8x128xf32, #tpu.memory_space<vmem>>, %arg7: memref<8x128xf32, #tpu.memory_space<vmem>>) attributes {dimension_semantics = [#tpu.dimension_semantics<parallel>, #tpu.dimension_semantics<arbitrary>], iteration_bounds = array<i64: 1, 1>, scalar_prefetch = 0 : i64, scratch_operands = 1 : i64, tpu.core_type = #tpu.core_type<tc>, window_params = [{transform_indices = @transform_0, window_bounds = array<i64: 8, 1024>}, {transform_indices = @transform_1, window_bounds = array<i64: 1024, 128>}, {pipeline_mode = #tpu.pipeline_mode<synchronous>, transform_indices = @transform_2, window_bounds = array<i64: 128, 128>}, {pipeline_mode = #tpu.pipeline_mode<synchronous>, transform_indices = @transform_3, window_bounds = array<i64: 1, 128>}, {transform_indices = @transform_4, window_bounds = array<i64: 8, 128>}]} {
    %c0_i32 = arith.constant 0 : i32
    %0 = arith.cmpi eq, %arg1, %c0_i32 : i32
    %1 = arith.extui %0 : i1 to i32
    %c0_i32_0 = arith.constant 0 : i32
    %2 = arith.cmpi ne, %1, %c0_i32_0 : i32
    scf.if %2 {
      %cst_10 = arith.constant 0.000000e+00 : f32
      %12 = vector.broadcast %cst_10 : f32 to vector<8x128xf32>
      %c0_11 = arith.constant 0 : index
      %c0_12 = arith.constant 0 : index
      %13 = vector.load %arg7[%c0_11, %c0_12] : memref<8x128xf32, #tpu.memory_space<vmem>>, vector<8x128xf32>
      tpu.vector_store %arg7[%c0_11, %c0_12], %12 {strides = array<i32>} : memref<8x128xf32, #tpu.memory_space<vmem>>, vector<8x128xf32>,
    } else {
    }
    %c0 = arith.constant 0 : index
    %c0_1 = arith.constant 0 : index
    %3 = vector.load %arg7[%c0, %c0_1] : memref<8x128xf32, #tpu.memory_space<vmem>>, vector<8x128xf32>
    %c0_2 = arith.constant 0 : index
    %c0_3 = arith.constant 0 : index
    %4 = vector.load %arg2[%c0_2, %c0_3] : memref<8x1024xbf16, #tpu.memory_space<vmem>>, vector<8x1024xbf16>
    %c0_4 = arith.constant 0 : index
    %c0_5 = arith.constant 0 : index
    %5 = vector.load %arg3[%c0_4, %c0_5] : memref<1024x128xbf16, #tpu.memory_space<vmem>>, vector<1024x128xbf16>
    %cst = arith.constant dense<0.000000e+00> : vector<8x128xf32>
    %6 = tpu.matmul %4, %5, %cst {dimension_numbers = #tpu.dot_dimension_numbers<[1], [0], [0], [1], [0, 0, 1, 1], [], []>} : vector<8x1024xbf16>, vector<1024x128xbf16>, vector<8x128xf32> -> vector<8x128xf32>
    %7 = arith.addf %3, %6 : vector<8x128xf32>
    %c0_6 = arith.constant 0 : index
    %c0_7 = arith.constant 0 : index
    %8 = vector.load %arg7[%c0_6, %c0_7] : memref<8x128xf32, #tpu.memory_space<vmem>>, vector<8x128xf32>
    tpu.vector_store %arg7[%c0_6, %c0_7], %7 {strides = array<i32>} : memref<8x128xf32, #tpu.memory_space<vmem>>, vector<8x128xf32>,
    %c0_i32_8 = arith.constant 0 : i32
    %9 = arith.cmpi eq, %arg1, %c0_i32_8 : i32
    %10 = arith.extui %9 : i1 to i32
    %c0_i32_9 = arith.constant 0 : i32
    %11 = arith.cmpi ne, %10, %c0_i32_9 : i32
    scf.if %11 {
      %c0_10 = arith.constant 0 : index
      %c0_11 = arith.constant 0 : index
      %12 = vector.load %arg7[%c0_10, %c0_11] : memref<8x128xf32, #tpu.memory_space<vmem>>, vector<8x128xf32>
      %13 = arith.mulf %12, %12 : vector<8x128xf32>
      %cst_12 = arith.constant dense<0.000000e+00> : vector<8xf32>
      %14 = vector.multi_reduction <add>, %13, %cst_12 [1] : vector<8x128xf32> to vector<8xf32>
      %15 = vector.shape_cast %14 : vector<8xf32> to vector<8x1xf32>
      %cst_13 = arith.constant 9.99999996E-13 : f32
      %16 = vector.broadcast %cst_13 : f32 to vector<8x1xf32>
      %17 = arith.addf %15, %16 : vector<8x1xf32>
      %18 = math.rsqrt %17 : vector<8x1xf32>
      %19 = vector.broadcast %18 : vector<8x1xf32> to vector<8x128xf32>
      %20 = arith.mulf %12, %19 : vector<8x128xf32>
      %21 = arith.truncf %20 : vector<8x128xf32> to vector<8x128xbf16>
      %c0_14 = arith.constant 0 : index
      %c0_15 = arith.constant 0 : index
      %22 = vector.load %arg4[%c0_14, %c0_15] : memref<128x128xbf16, #tpu.memory_space<vmem>>, vector<128x128xbf16>
      %cst_16 = arith.constant dense<0.000000e+00> : vector<8x128xf32>
      %23 = tpu.matmul %21, %22, %cst_16 {dimension_numbers = #tpu.dot_dimension_numbers<[1], [0], [0], [1], [0, 0, 1, 1], [], []>} : vector<8x128xbf16>, vector<128x128xbf16>, vector<8x128xf32> -> vector<8x128xf32>
      %c0_17 = arith.constant 0 : index
      %c0_18 = arith.constant 0 : index
      %24 = vector.load %arg5[%c0_17, %c0_18] : memref<1x128xf32, #tpu.memory_space<vmem>>, vector<1x128xf32>
      %25 = vector.broadcast %24 : vector<1x128xf32> to vector<8x128xf32>
      %26 = arith.addf %23, %25 : vector<8x128xf32>
      %cst_19 = arith.constant dense<0xFF800000> : vector<8xf32>
      %27 = vector.multi_reduction <maximumf>, %26, %cst_19 [1] : vector<8x128xf32> to vector<8xf32>
      %28 = vector.shape_cast %27 : vector<8xf32> to vector<8x1xf32>
      %29 = vector.broadcast %28 : vector<8x1xf32> to vector<8x128xf32>
      %30 = arith.subf %26, %29 : vector<8x128xf32>
      %31 = math.exp %30 : vector<8x128xf32>
      %cst_20 = arith.constant dense<0.000000e+00> : vector<8xf32>
      %32 = vector.multi_reduction <add>, %31, %cst_20 [1] : vector<8x128xf32> to vector<8xf32>
      %33 = vector.shape_cast %32 : vector<8xf32> to vector<8x1xf32>
      %34 = tpu.reciprocal %33 {approx = true} : vector<8x1xf32> -> vector<8x1xf32>
      %35 = vector.broadcast %34 : vector<8x1xf32> to vector<8x128xf32>
      %36 = arith.mulf %31, %35 : vector<8x128xf32>
      %c0_21 = arith.constant 0 : index
      %c0_22 = arith.constant 0 : index
      %37 = vector.load %arg6[%c0_21, %c0_22] : memref<8x128xf32, #tpu.memory_space<vmem>>, vector<8x128xf32>
      tpu.vector_store %arg6[%c0_21, %c0_22], %36 {strides = array<i32>} : memref<8x128xf32, #tpu.memory_space<vmem>>, vector<8x128xf32>,
    } else {
    }
    return
  }
  func.func @transform_0(%arg0: i32, %arg1: i32) -> (i32, i32) {
    %c0_i32 = arith.constant 0 : i32
    return %arg0, %arg1 : i32, i32
  }
  func.func @transform_1(%arg0: i32, %arg1: i32) -> (i32, i32) {
    %c0_i32 = arith.constant 0 : i32
    %c0_i32_0 = arith.constant 0 : i32
    return %arg1, %c0_i32 : i32, i32
  }
  func.func @transform_2(%arg0: i32, %arg1: i32) -> (i32, i32) {
    %c0_i32 = arith.constant 0 : i32
    %c0_i32_0 = arith.constant 0 : i32
    %c0_i32_1 = arith.constant 0 : i32
    return %c0_i32, %c0_i32_0 : i32, i32
  }
  func.func @transform_3(%arg0: i32, %arg1: i32) -> (i32, i32) {
    %c0_i32 = arith.constant 0 : i32
    %c0_i32_0 = arith.constant 0 : i32
    %c0_i32_1 = arith.constant 0 : i32
    return %c0_i32, %c0_i32_0 : i32, i32
  }
  func.func @transform_4(%arg0: i32, %arg1: i32) -> (i32, i32) {
    %c0_i32 = arith.constant 0 : i32
    %c0_i32_0 = arith.constant 0 : i32
    return %arg0, %c0_i32 : i32, i32
  }
}

</mosaic_0001>

<bundles_post_ra>
// kernel: tpu_custom_call.1
= control target key start
LH: loop header
LB: loop body
LE: loop exit
PB: predicated region body
PF: predicated region fallthrough
CT: control target
= control target key end

     0   :  { %9 = vsyncpa [#allocation4], 0  ;;  %s1369_s0 = inlined_call_operand.hbm [shape: bf16[8,1024], index: 0, kind: input, shape index: {}]   ;;  %s1370_s1 = inlined_call_operand.hbm [shape: bf16[1024,128], index: 1, kind: input, shape index: {}]   ;;  %s1371_s2 = inlined_call_operand.hbm [shape: bf16[128,128], index: 2, kind: input, shape index: {}]   ;;  %s1372_s3 = inlined_call_operand.vmem [shape: f32[1,128], index: 3, kind: input, shape index: {}]   ;;  %s1373_s4 = inlined_call_operand.hbm [shape: f32[8,128], index: 4, kind: output, shape index: {}]  }
   0x1   :  { %10 = vsyncpa [#allocation7], 0  ;;  %s27_s17 = sshll.u32 %s1370_s1, 4  ;;  %s28_s17 = int_to_ptr.hbm [resolvable:$true] %s27_s17 }
   0x2   :  { %11 = vsyncpa [#allocation5], 0  ;;  %s1323_s18 = smov [#allocation6]   ;;  %s17_s22 = sshll.u32 %s1369_s0, 4  ;;  %s18_s22 = int_to_ptr.hbm [resolvable:$true] %s17_s22 }
   0x3   :  { %s29_s19 = sshll.u32 %s1323_s18, 4  ;;  %s1324_s23 = smov 64   ;;  %s30_s19 = int_to_ptr.vmem [resolvable:$true] %s29_s19 }
   0x4   :  { %s1325_s24 = smov 4   ;;  %s1326_s25 = smov [#allocation3]  }
   0x5   :  { %35 = dma.hbm_to_vmem [thread:$0]  %s28_s17, 8192, %s30_s19, [#allocation7], %s1324_s23, %s1324_s23, %s1325_s24  }
   0x6   :  { %s19_s26 = sshll.u32 %s1326_s25, 4  ;;  %s40_s29 = sshll.u32 %s1371_s2, 4  ;;  %s20_s26 = int_to_ptr.vmem [resolvable:$true] %s19_s26  ;;  %s41_s29 = int_to_ptr.hbm [resolvable:$true] %s40_s29 }
   0x7   :  { %22 = dma.hbm_to_vmem [thread:$0]  %s18_s22, 512, %s20_s26, [#allocation4]  }
   0x8   :  { %s1327_s1 = smov [#allocation8]  }
   0x9   :  { %s42_s30 = sshll.u32 %s1327_s1, 4  ;;  %s43_s30 = int_to_ptr.vmem [resolvable:$true] %s42_s30 }
   0xa   :  { %48 = dma.hbm_to_vmem [thread:$0]  %s41_s29, 1024, %s43_s30, [#allocation7], %s1324_s23, %s1324_s23, %s1325_s24  }
   0xb   :  { %1317 = dma.done.wait [#allocation4], 512  }
   0xc   :  { %1318 = vsyncadd [#allocation4], 4294966784 }
   0xd   :  { %1319 = dma.done.wait [#allocation7], 9216  }
   0xe   :  { %1320 = vsyncadd [#allocation7], 4294958080  ;;  %v1143_v0 = vld [vmem:[#allocation6 + $0x38] sm:$0xff]  ;;  %v1142_v4 = vld [vmem:[#allocation6 + $0x30] sm:$0xff]  ;;  %s1328_s5 = smov [#allocation9]   ;;  %s837_s9 = sshll.u32 %s1373_s4, 4  ;;  %s838_s9 = int_to_ptr.hbm [resolvable:$true] %s837_s9 }
   0xf   :  { %v1151_v1 = vld [vmem:[#allocation6 + $0x78] sm:$0xff]  ;;  %613 = vmatpush.bf16.msra.mxu0 %v1143_v0  ;;  %v1150_v5 = vld [vmem:[#allocation6 + $0x70] sm:$0xff]  ;;  %v1141_v8 = vld [vmem:[#allocation6 + $0x28] sm:$0xff]  ;;  %s835_s6 = sshll.u32 %s1328_s5, 4  ;;  %s836_s6 = int_to_ptr.vmem [resolvable:$true] %s835_s6 }
  0x10   :  { %v1159_v2 = vld [vmem:[#allocation6 + $0xb8] sm:$0xff]  ;;  %626 = vmatpush.bf16.msra.mxu1 %v1151_v1  ;;  %v1158_v6 = vld [vmem:[#allocation6 + $0xb0] sm:$0xff]  ;;  %v1149_v9 = vld [vmem:[#allocation6 + $0x68] sm:$0xff] }
  0x11   :  { %v1167_v3 = vld [vmem:[#allocation6 + $0xf8] sm:$0xff]  ;;  %639 = vmatpush.bf16.msra.mxu2 %v1159_v2  ;;  %v1166_v7 = vld [vmem:[#allocation6 + $0xf0] sm:$0xff]  ;;  %v1157_v10 = vld [vmem:[#allocation6 + $0xa8] sm:$0xff] }
  0x12   :  { %652 = vmatpush.bf16.msra.mxu3 %v1167_v3  ;;  %v1165_v11 = vld [vmem:[#allocation6 + $0xe8] sm:$0xff]  ;;  %v1140_v12 = vld [vmem:[#allocation6 + $0x20] sm:$0xff]  ;;  %v1139_v16 = vld [vmem:[#allocation6 + $0x18] sm:$0xff] }
  0x13   :  { %614 = vmatpush.bf16.msra.mxu0 %v1142_v4  ;;  %v1148_v13 = vld [vmem:[#allocation6 + $0x60] sm:$0xff]  ;;  %v1147_v17 = vld [vmem:[#allocation6 + $0x58] sm:$0xff]  ;;  %v1138_v20 = vld [vmem:[#allocation6 + $0x10] sm:$0xff] }
  0x14   :  { %627 = vmatpush.bf16.msra.mxu1 %v1150_v5  ;;  %v1156_v14 = vld [vmem:[#allocation6 + $0xa0] sm:$0xff]  ;;  %v1155_v18 = vld [vmem:[#allocation6 + $0x98] sm:$0xff]  ;;  %v1146_v21 = vld [vmem:[#allocation6 + $0x50] sm:$0xff] }
  0x15   :  { %640 = vmatpush.bf16.msra.mxu2 %v1158_v6  ;;  %v1164_v15 = vld [vmem:[#allocation6 + $0xe0] sm:$0xff]  ;;  %v1163_v19 = vld [vmem:[#allocation6 + $0xd8] sm:$0xff]  ;;  %v1154_v22 = vld [vmem:[#allocation6 + $0x90] sm:$0xff] }
  0x16   :  { %653 = vmatpush.bf16.msra.mxu3 %v1166_v7  ;;  %v1162_v23 = vld [vmem:[#allocation6 + $0xd0] sm:$0xff]  ;;  %v1137_v24 = vld [vmem:[#allocation6 + $0x8] sm:$0xff]  ;;  %v69_v29 = vld [vmem:[#allocation3] sm:$0xff] }
  0x17   :  { %615 = vmatpush.bf16.msra.mxu0 %v1141_v8  ;;  %v1145_v25 = vld [vmem:[#allocation6 + $0x48] sm:$0xff]  ;;  %v1136_v30 = vld [vmem:[#allocation6] sm:$0xff]  ;;  %v205_v33 = vunpack.c.l.b16 %v69_v29  ;;  %v206_v37 = vunpack.c.h.b16 %v69_v29  ;;  %v1175_v38 = vld [vmem:[#allocation6 + $0x138] sm:$0xff] }
  0x18   :  { %628 = vmatpush.bf16.msra.mxu1 %v1149_v9  ;;  %v1153_v26 = vld [vmem:[#allocation6 + $0x88] sm:$0xff]  ;;  %v1144_v31 = vld [vmem:[#allocation6 + $0x40] sm:$0xff]  ;;  %v1183_v39 = vld [vmem:[#allocation6 + $0x178] sm:$0xff] }
  0x19   :  { %641 = vmatpush.bf16.msra.mxu2 %v1157_v10  ;;  %v1161_v27 = vld [vmem:[#allocation6 + $0xc8] sm:$0xff]  ;;  %v1152_v34 = vld [vmem:[#allocation6 + $0x80] sm:$0xff]  ;;  %v1191_v40 = vld [vmem:[#allocation6 + $0x1b8] sm:$0xff]  ;;  %v213_v43 = vpack.c.b16 %v205_v33, %v205_v33  ;;  %v214_v45 = vpack.c.b16 %v206_v37, %v206_v37 }
  0x1a   :  { %654 = vmatpush.bf16.msra.mxu3 %v1165_v11  ;;  %v70_v28 = vld [vmem:[#allocation3 + $0x8] sm:$0xff]  ;;  %v1160_v35 = vld [vmem:[#allocation6 + $0xc0] sm:$0xff]  ;;  %v1199_v41 = vld [vmem:[#allocation6 + $0x1f8] sm:$0xff] }
  0x1b   :  { %616 = vmatpush.bf16.msra.mxu0 %v1140_v12  ;;  %v207_v32 = vunpack.c.l.b16 %v70_v28  ;;  %v208_v36 = vunpack.c.h.b16 %v70_v28  ;;  %v1174_v46 = vld [vmem:[#allocation6 + $0x130] sm:$0xff]  ;;  %v1173_v50 = vld [vmem:[#allocation6 + $0x128] sm:$0xff]  ;;  %v1172_v54 = vld [vmem:[#allocation6 + $0x120] sm:$0xff] }
  0x1c   :  { %629 = vmatpush.bf16.msra.mxu1 %v1148_v13  ;;  %v1182_v47 = vld [vmem:[#allocation6 + $0x170] sm:$0xff]  ;;  %v1181_v51 = vld [vmem:[#allocation6 + $0x168] sm:$0xff]  ;;  %v1180_v55 = vld [vmem:[#allocation6 + $0x160] sm:$0xff] }
  0x1d   :  { %642 = vmatpush.bf16.msra.mxu2 %v1156_v14  ;;  %v215_v42 = vpack.c.b16 %v207_v32, %v207_v32  ;;  %v216_v44 = vpack.c.b16 %v208_v36, %v208_v36  ;;  %v1190_v48 = vld [vmem:[#allocation6 + $0x1b0] sm:$0xff]  ;;  %v1189_v52 = vld [vmem:[#allocation6 + $0x1a8] sm:$0xff]  ;;  %v1188_v56 = vld [vmem:[#allocation6 + $0x1a0] sm:$0xff] }
  0x1e   :  { %655 = vmatpush.bf16.msra.mxu3 %v1164_v15  ;;  %v1198_v49 = vld [vmem:[#allocation6 + $0x1f0] sm:$0xff]  ;;  %v1197_v53 = vld [vmem:[#allocation6 + $0x1e8] sm:$0xff]  ;;  %v1196_v57 = vld [vmem:[#allocation6 + $0x1e0] sm:$0xff] }
  0x1f   :  { %617 = vmatpush.bf16.msra.mxu0 %v1139_v16  ;;  %v1171_v58 = vld [vmem:[#allocation6 + $0x118] sm:$0xff]  ;;  %v1170_v62 = vld [vmem:[#allocation6 + $0x110] sm:$0xff]  ;;  %v1169_v2 = vld [vmem:[#allocation6 + $0x108] sm:$0xff] }
  0x20   :  { %630 = vmatpush.bf16.msra.mxu1 %v1147_v17  ;;  %v1179_v59 = vld [vmem:[#allocation6 + $0x158] sm:$0xff]  ;;  %v1178_v63 = vld [vmem:[#allocation6 + $0x150] sm:$0xff]  ;;  %v1177_v3 = vld [vmem:[#allocation6 + $0x148] sm:$0xff] }
  0x21   :  { %643 = vmatpush.bf16.msra.mxu2 %v1155_v18  ;;  %v1187_v60 = vld [vmem:[#allocation6 + $0x198] sm:$0xff]  ;;  %v1186_v0 = vld [vmem:[#allocation6 + $0x190] sm:$0xff]  ;;  %v1185_v5 = vld [vmem:[#allocation6 + $0x188] sm:$0xff] }
  0x22   :  { %656 = vmatpush.bf16.msra.mxu3 %v1163_v19  ;;  %v1195_v61 = vld [vmem:[#allocation6 + $0x1d8] sm:$0xff]  ;;  %v1194_v1 = vld [vmem:[#allocation6 + $0x1d0] sm:$0xff]  ;;  %v1193_v6 = vld [vmem:[#allocation6 + $0x1c8] sm:$0xff] }
  0x23   :  { %618 = vmatpush.bf16.msra.mxu0 %v1138_v20  ;;  %v71_v4 = vld [vmem:[#allocation3 + $0x10] sm:$0xff]  ;;  %v72_v7 = vld [vmem:[#allocation3 + $0x18] sm:$0xff]  ;;  %v1168_v10 = vld [vmem:[#allocation6 + $0x100] sm:$0xff] }
  0x24   :  { %631 = vmatpush.bf16.msra.mxu1 %v1146_v21  ;;  %v209_v8 = vunpack.c.l.b16 %v71_v4  ;;  %v210_v9 = vunpack.c.h.b16 %v71_v4  ;;  %v1176_v11 = vld [vmem:[#allocation6 + $0x140] sm:$0xff]  ;;  %v211_v12 = vunpack.c.l.b16 %v72_v7  ;;  %v212_v13 = vunpack.c.h.b16 %v72_v7  ;;  %v1206_v28 = vld [vmem:[#allocation8 + $0x30] sm:$0xff] }
  0x25   :  { %644 = vmatpush.bf16.msra.mxu2 %v1154_v22  ;;  %v1184_v14 = vld [vmem:[#allocation6 + $0x180] sm:$0xff] }
  0x26   :  { %657 = vmatpush.bf16.msra.mxu3 %v1162_v23  ;;  %v1192_v15 = vld [vmem:[#allocation6 + $0x1c0] sm:$0xff]  ;;  %v217_v16 = vpack.c.b16 %v209_v8, %v209_v8  ;;  %v218_v17 = vpack.c.b16 %v210_v9, %v210_v9  ;;  %v219_v18 = vpack.c.b16 %v211_v12, %v211_v12  ;;  %v220_v19 = vpack.c.b16 %v212_v13, %v212_v13 }
  0x27   :  { %619 = vmatpush.bf16.msra.mxu0 %v1137_v24 }
  0x28   :  { %632 = vmatpush.bf16.msra.mxu1 %v1145_v25 }
  0x29   :  { %645 = vmatpush.bf16.msra.mxu2 %v1153_v26  ;;  %v1207_v26 = vld [vmem:[#allocation8 + $0x38] sm:$0xff] }
  0x2a   :  { %658 = vmatpush.bf16.msra.mxu3 %v1161_v27 }
  0x2b   :  { %620 = vmatpush.bf16.msra.mxu0 %v1136_v30 }
  0x2c   :  { %633 = vmatpush.bf16.msra.mxu1 %v1144_v31 }
  0x2d   :  { %646 = vmatpush.bf16.msra.mxu2 %v1152_v34 }
  0x2e   :  { %659 = vmatpush.bf16.msra.mxu3 %v1160_v35  ;;  %621 = vmatmul.bf16.vlgmr.msra.gmra.mxu0 %v213_v43 }
  0x2f   :  { %665 = vmatpush.bf16.msrb.mxu0 %v1175_v38  ;;  %634 = vmatmul.bf16.vlgmr.msra.gmra.mxu1 %v214_v45 }
  0x30   :  { %678 = vmatpush.bf16.msrb.mxu1 %v1183_v39  ;;  %647 = vmatmul.bf16.vlgmr.msra.gmra.mxu2 %v215_v42 }
  0x31   :  { %691 = vmatpush.bf16.msrb.mxu2 %v1191_v40  ;;  %660 = vmatmul.bf16.vlgmr.msra.gmra.mxu3 %v216_v44 }
  0x32   :  { %704 = vmatpush.bf16.msrb.mxu3 %v1199_v41 }
  0x33   :  { %666 = vmatpush.bf16.msrb.mxu0 %v1174_v46  ;;  %v1205_v46 = vld [vmem:[#allocation8 + $0x28] sm:$0xff] }
  0x34   :  { %679 = vmatpush.bf16.msrb.mxu1 %v1182_v47  ;;  %v1204_v47 = vld [vmem:[#allocation8 + $0x20] sm:$0xff] }
  0x35   :  { %692 = vmatpush.bf16.msrb.mxu2 %v1190_v48  ;;  %v1203_v48 = vld [vmem:[#allocation8 + $0x18] sm:$0xff] }
  0x36   :  { %705 = vmatpush.bf16.msrb.mxu3 %v1198_v49  ;;  %v1202_v49 = vld [vmem:[#allocation8 + $0x10] sm:$0xff] }
  0x37   :  { %667 = vmatpush.bf16.msrb.mxu0 %v1173_v50  ;;  %v1201_v50 = vld [vmem:[#allocation8 + $0x8] sm:$0xff] }
  0x38   :  { %680 = vmatpush.bf16.msrb.mxu1 %v1181_v51  ;;  %v1200_v51 = vld [vmem:[#allocation8] sm:$0xff] }
  0x39   :  { %693 = vmatpush.bf16.msrb.mxu2 %v1189_v52 }
  0x3a   :  { %706 = vmatpush.bf16.msrb.mxu3 %v1197_v53 }
  0x3b   :  { %668 = vmatpush.bf16.msrb.mxu0 %v1172_v54 }
  0x3c   :  { %681 = vmatpush.bf16.msrb.mxu1 %v1180_v55 }
  0x3d   :  { %694 = vmatpush.bf16.msrb.mxu2 %v1188_v56 }
  0x3e   :  { %707 = vmatpush.bf16.msrb.mxu3 %v1196_v57 }
  0x3f   :  { %669 = vmatpush.bf16.msrb.mxu0 %v1171_v58 }
  0x40   :  { %682 = vmatpush.bf16.msrb.mxu1 %v1179_v59 }
  0x41   :  { %695 = vmatpush.bf16.msrb.mxu2 %v1187_v60 }
  0x42   :  { %708 = vmatpush.bf16.msrb.mxu3 %v1195_v61 }
  0x43   :  { %670 = vmatpush.bf16.msrb.mxu0 %v1170_v62 }
  0x44   :  { %683 = vmatpush.bf16.msrb.mxu1 %v1178_v63  ;;  %v1214_v63 = vld [vmem:[%s1372_s3] ss:$0 sm:$0xff] }
  0x45   :  { %696 = vmatpush.bf16.msrb.mxu2 %v1186_v0 }
  0x46   :  { %709 = vmatpush.bf16.msrb.mxu3 %v1194_v1 }
  0x47   :  { %671 = vmatpush.bf16.msrb.mxu0 %v1169_v2 }
  0x48   :  { %684 = vmatpush.bf16.msrb.mxu1 %v1177_v3 }
  0x49   :  { %697 = vmatpush.bf16.msrb.mxu2 %v1185_v5 }
  0x4a   :  { %710 = vmatpush.bf16.msrb.mxu3 %v1193_v6 }
  0x4b   :  { %672 = vmatpush.bf16.msrb.mxu0 %v1168_v10 }
  0x4c   :  { %685 = vmatpush.bf16.msrb.mxu1 %v1176_v11 }
  0x4d   :  { %698 = vmatpush.bf16.msrb.mxu2 %v1184_v14 }
  0x4e   :  { %711 = vmatpush.bf16.msrb.mxu3 %v1192_v15  ;;  %673 = vmatmul.bf16.vlgmr.msrb.gmra.mxu0 %v217_v16 }
  0x4f   :  { %686 = vmatmul.bf16.vlgmr.msrb.gmra.mxu1 %v218_v17  ;;  %807 = vmatpush.bf16.msra.mxu0 %v1207_v26 }
  0x50   :  { %699 = vmatmul.bf16.vlgmr.msrb.gmra.mxu2 %v219_v18 }
  0x51   :  { %712 = vmatmul.bf16.vlgmr.msrb.gmra.mxu3 %v220_v19 }
  0x53   :  { %808 = vmatpush.bf16.msra.mxu0 %v1206_v28 }
  0x57   :  { %809 = vmatpush.bf16.msra.mxu0 %v1205_v46 }
  0x5b   :  { %810 = vmatpush.bf16.msra.mxu0 %v1204_v47 }
  0x5f   :  { %811 = vmatpush.bf16.msra.mxu0 %v1203_v48 }
  0x63   :  { %812 = vmatpush.bf16.msra.mxu0 %v1202_v49 }
  0x67   :  { %813 = vmatpush.bf16.msra.mxu0 %v1201_v50 }
  0x6b   :  { %814 = vmatpush.bf16.msra.mxu0 %v1200_v51 }
  0xab   :  { %v622_v20 = vpop.f32.mrf.mxu0 }
  0xac   :  { %v635_v21 = vpop.f32.mrf.mxu1 }
  0xad   :  { %v636_v30 = vadd.f32 %v635_v21, %v622_v20 }
  0xb3   :  { %v648_v22 = vpop.f32.mrf.mxu2  ;;  %v624_v24 = vpop.f32.mrf.mxu0 }
  0xb4   :  { %v661_v23 = vpop.f32.mrf.mxu3  ;;  %v637_v25 = vpop.f32.mrf.mxu1  ;;  %v649_v31 = vadd.f32 %v648_v22, %v636_v30 }
  0xb6   :  { %v662_v32 = vadd.f32 %v661_v23, %v649_v31 }
  0xbb   :  { %v650_v27 = vpop.f32.mrf.mxu2 }
  0xbc   :  { %v663_v29 = vpop.f32.mrf.mxu3 }
  0xcb   :  { %v674_v33 = vpop.f32.mrf.mxu0 }
  0xcc   :  { %v687_v34 = vpop.f32.mrf.mxu1  ;;  %v675_v35 = vadd.f32 %v674_v33, %v662_v32 }
  0xce   :  { %v688_v36 = vadd.f32 %v687_v34, %v675_v35 }
  0xd3   :  { %v700_v37 = vpop.f32.mrf.mxu2  ;;  %v676_v40 = vpop.f32.mrf.mxu0 }
  0xd4   :  { %v713_v38 = vpop.f32.mrf.mxu3  ;;  %v701_v39 = vadd.f32 %v700_v37, %v688_v36  ;;  %v689_v41 = vpop.f32.mrf.mxu1 }
  0xd6   :  { %v714_v42 = vadd.f32 %v713_v38, %v701_v39 }
  0xd8   :  { %v723_v43 = vmul.f32 %v714_v42, %v714_v42 }
  0xda   :  { %724 = vadd.xlane.f32.xlu0 %v723_v43 }
  0xdb   :  { %v702_v44 = vpop.f32.mrf.mxu2 }
  0xdc   :  { %v715_v45 = vpop.f32.mrf.mxu3 }
 0x14d   :  { %v725_v52 = vpop.xlane.xlu0 %724 }
 0x14e   :  { %v726_v53 = vadd.f32 1e-12, %v725_v52 }
 0x150   :  { %1215 = vrsqrt.f32 %v726_v53  ;;  %vm733_vm1 = vweird.f32 %v726_v53 }
 0x156   :  { %v1216_v54 = vpop.eup %1215 }
 0x157   :  { %v728_v55 = vmul.f32 %v1216_v54, %v726_v53  ;;  %vm734_vm0 = vweird.f32 %v1216_v54 }
 0x158   :  { %vm735_vm2 = vmor %vm733_vm1, %vm734_vm0 }
 0x159   :  { %v729_v56 = vmul.f32 %v1216_v54, %v728_v55 }
 0x15b   :  { %v730_v57 = vmul.f32 0.5, %v729_v56 }
 0x15d   :  { %v731_v58 = vsub.f32 1.5, %v730_v57 }
 0x15f   :  { %v732_v59 = vmul.f32 %v1216_v54, %v731_v58 }
 0x161   :  { %v736_v60 = vsel %vm735_vm2, %v1216_v54, %v732_v59 }
 0x162   :  { %v737_v61 = vmul.f32 %v736_v60, %v714_v42 }
 0x164   :  { %v738_v62 = vpack.c.bf16 %v737_v61, %v737_v61 }
 0x166   :  { %815 = vmatmul.bf16.vlgmr.msra.gmra.mxu0 %v738_v62 }
 0x1e3   :  { %v816_v0 = vpop.f32.mrf.mxu0 }
 0x1e4   :  { %v817_v1 = vadd.f32 %v1214_v63, %v816_v0 }
 0x1e6   :  { %820 = vmax.xlane.f32.xlu0 %v817_v1 }
 0x1eb   :  { %v818_v2 = vpop.f32.mrf.mxu0 }
 0x259   :  { %v821_v3 = vpop.xlane.xlu0 %820 }
 0x25a   :  { %v822_v4 = vsub.f32 %v817_v1, %v821_v3 }
 0x25c   :  { %v823_v5 = vmul.f32 1.442695, %v822_v4 }
 0x25e   :  { %1217 = vpow2.f32 %v823_v5 }
 0x264   :  { %v1218_v6 = vpop.eup %1217 }
 0x265   :  { %825 = vadd.xlane.f32.xlu1 %v1218_v6 }
 0x2d8   :  { %v826_v7 = vpop.xlane.xlu1 %825 }
 0x2d9   :  { %1219 = vrcp.f32 %v826_v7 }
 0x2df   :  { %v1220_v8 = vpop.eup %1219 }
 0x2e0   :  { %v828_v9 = vmul.f32 %v1220_v8, %v1218_v6 }
 0x2e2   :  { %829 = vst [vmem:[#allocation9] sm:$0xff] %v828_v9 }
 0x2e3   :  { %840 = dma.vmem_to_hbm [thread:$0]  %s836_s6, 128, %s838_s9, [#allocation5]  }
 0x2e4   :  { %1321 = dma.done.wait [#allocation5], 128  }
 0x2e5   :  { %1322 = vsyncadd [#allocation5], 4294967168 }
 0x2e6   :  { %845 = vsyncpa [#allocation4], 1 }
 0x2e7   :  { %846 = vsyncpa [#allocation7], 1 }
 0x2e8   :  { %847 = vsyncpa [#allocation5], 1 }

</bundles_post_ra>
